<compile_context>
chip_gen: v5e
topology: v5e:2x2
jax: 0.10.0
libtpu: 0.0.40
codegen_flags: <defaults>
</compile_context>

<pallas_src>
import functools
import math

import jax
import jax.numpy as jnp
from jax.experimental import pallas as pl
from jax.experimental.pallas import tpu as pltpu


_MIB = 1024 * 1024


def _cdiv(a, b):
    return -(-a // b)


def _round_up(v, m):
    return _cdiv(v, m) * m


# --------------------------------------------------------------------------
# Generation-aware hardware queries (trace-time, host side)
# --------------------------------------------------------------------------
def _vmem_budget():
    """Return (vmem_limit_bytes, sizing_budget_bytes) for this chip.

    v5e/v6e (128 MiB VMEM) -> 64 MiB scoped limit; v7x (64 MiB) -> 32 MiB.
    The sizing budget leaves fixed headroom for accumulators/misc.
    """
    try:
        cap = int(pltpu.get_tpu_info().vmem_capacity_bytes)
    except Exception:
        cap = 64 * _MIB                      # conservative: v7x per-TC VMEM
    vmem_limit = max(32 * _MIB, min(cap // 2, 64 * _MIB))
    budget = vmem_limit - 2 * _MIB
    return vmem_limit, budget


def _num_tensorcores():
    """Best-effort TensorCore count per device (1 on v5e/v6e, 2 on v7x)."""
    try:
        info = pltpu.get_tpu_info()
        for name in ("num_cores", "core_count", "num_tensorcores",
                     "tensorcore_count", "cores_per_chip"):
            v = getattr(info, name, None)
            if isinstance(v, int) and 1 <= v <= 8:
                return v
    except Exception:
        pass
    try:
        dev = jax.devices()[0]
        v = getattr(dev, "num_cores", None)
        if isinstance(v, int) and 1 <= v <= 8:
            return v
        kind = str(getattr(dev, "device_kind", "")).lower()
        if "v7" in kind or "7x" in kind:
            return 2
    except Exception:
        pass
    return 1


# --------------------------------------------------------------------------
# Chunk planning: exact (no-overshoot) split of a reduction extent
# --------------------------------------------------------------------------
def _plan_split(extent, tile_max, gran, num_cores):
    """Return (tile, p_grid, kp_grid) with p_grid*kp_grid == cdiv(extent, tile).

    tile is a multiple of `gran` (or equals `extent`), so no grid step ever
    re-fetches a fully-masked overshoot block.
    """
    tile_max = min(tile_max, extent)
    if tile_max < extent:
        tile_max = max(gran, (tile_max // gran) * gran)
        tile_max = min(tile_max, extent)
    n0 = _cdiv(extent, tile_max)

    if num_cores > 1 and extent > gran:
        kp = _cdiv(max(n0, num_cores), num_cores)
        total = num_cores * kp
        tile = min(tile_max, _round_up(_cdiv(extent, total), gran))
        if tile < extent and _cdiv(extent, tile) == total:
            return tile, num_cores, kp

    return tile_max, 1, n0


# --------------------------------------------------------------------------
# Kernels
# --------------------------------------------------------------------------
def _pmse3d_kernel(x_ref, y_ref, *rest, has_mask, tile_r, rows_total,
                   kp_grid, tail_possible):
    """Primary path. Grid (P, KP); input block (B, tile_r, 128).

    Accumulates per-batch, lane-wise partial sums into a (1, B, 128) output
    block per parallel slice (resident across the 'arbitrary' kp axis).
    """
    if has_mask:
        m_ref, se_ref, ms_ref = rest
    else:
        (se_ref,) = rest
        m_ref = ms_ref = None

    p = pl.program_id(0)
    kp = pl.program_id(1)
    chunk = p * kp_grid + kp          # global row-chunk index (never overshoots)

    @pl.when(kp == 0)
    def _init():
        se_ref[...] = jnp.zeros_like(se_ref)
        if has_mask:
            ms_ref[...] = jnp.zeros_like(ms_ref)

    d = x_ref[...].astype(jnp.float32) - y_ref[...].astype(jnp.float32)

    def _accumulate(valid):
        sq = d * d
        if valid is not None:                       # NaN-safe tail masking
            sq = jnp.where(valid, sq, 0.0)
        if has_mask:
            m = m_ref[...].astype(jnp.float32)
            if valid is not None:
                m = jnp.where(valid, m, 0.0)
            se_ref[...] += jnp.sum(sq * m, axis=1)[None]
            ms_ref[...] += jnp.sum(m, axis=1)[None]
        else:
            se_ref[...] += jnp.sum(sq, axis=1)[None]

    if not tail_possible:
        _accumulate(None)
    else:
        rows_left = rows_total - chunk * tile_r
        is_full = rows_left >= tile_r

        @pl.when(is_full)
        def _full():
            _accumulate(None)

        @pl.when(jnp.logical_not(is_full))
        def _tail():
            row = jax.lax.broadcasted_iota(jnp.int32, d.shape, 1)
            _accumulate(row < rows_left)


def _pmse2d_kernel(x_ref, y_ref, *rest, has_mask, tile_n, n_total,
                   kp_grid, tail_possible):
    """Fallback path (N % 128 != 0). Grid (P, KP); input block (B, tile_n)."""
    if has_mask:
        m_ref, se_ref, ms_ref = rest
    else:
        (se_ref,) = rest
        m_ref = ms_ref = None

    p = pl.program_id(0)
    kp = pl.program_id(1)
    chunk = p * kp_grid + kp

    @pl.when(kp == 0)
    def _init():
        se_ref[...] = jnp.zeros_like(se_ref)
        if has_mask:
            ms_ref[...] = jnp.zeros_like(ms_ref)

    d = x_ref[...].astype(jnp.float32) - y_ref[...].astype(jnp.float32)
    sq = d * d

    valid = None
    if tail_possible:
        col = jax.lax.broadcasted_iota(jnp.int32, d.shape, 1)
        valid = col < (n_total - chunk * tile_n)
        sq = jnp.where(valid, sq, 0.0)

    if has_mask:
        m = m_ref[...].astype(jnp.float32)
        if valid is not None:
            m = jnp.where(valid, m, 0.0)
        se_ref[...] += jnp.sum(sq * m, axis=1, keepdims=True)[None]
        ms_ref[...] += jnp.sum(m, axis=1, keepdims=True)[None]
    else:
        se_ref[...] += jnp.sum(sq, axis=1, keepdims=True)[None]


# --------------------------------------------------------------------------
# pallas_call wrappers
# --------------------------------------------------------------------------
def _pmse_sums_3d(x3, y3, m3, tile_r, p_grid, kp_grid, vmem_limit):
    B, R, L = x3.shape                      # L == 128
    has_mask = m3 is not None
    tail_possible = (p_grid * kp_grid * tile_r) > R

    kernel = functools.partial(
        _pmse3d_kernel, has_mask=has_mask, tile_r=tile_r, rows_total=R,
        kp_grid=kp_grid, tail_possible=tail_possible)

    in_spec = pl.BlockSpec((B, tile_r, L), lambda p, kp: (0, p * kp_grid + kp, 0))
    out_spec = pl.BlockSpec((1, B, L), lambda p, kp: (p, 0, 0))
    part = jax.ShapeDtypeStruct((p_grid, B, L), jnp.float32)

    inputs = (x3, y3, m3) if has_mask else (x3, y3)
    in_specs = [in_spec] * len(inputs)
    out_shape = (part, part) if has_mask else part
    out_specs = (out_spec, out_spec) if has_mask else out_spec

    outs = pl.pallas_call(
        kernel,
        out_shape=out_shape,
        grid_spec=pltpu.PrefetchScalarGridSpec(
            num_scalar_prefetch=0,
            grid=(p_grid, kp_grid),
            in_specs=in_specs,
            out_specs=out_specs,
        ),
        compiler_params=pltpu.CompilerParams(
            # TODO(synk): on v7x, verify in the profile that "parallel" shards
            # the p axis across both TensorCores; switch to pltpu.CORE_PARALLEL
            # if it does not.
            dimension_semantics=("parallel", "arbitrary"),
            vmem_limit_bytes=vmem_limit,
        ),
    )(*inputs)

    if has_mask:
        se_part, ms_part = outs
        return jnp.sum(se_part, axis=(0, 2)), jnp.sum(ms_part, axis=(0, 2))
    return jnp.sum(outs, axis=(0, 2)), None


def _pmse_sums_2d(x2, y2, m2, tile_n, p_grid, kp_grid, vmem_limit):
    B, N = x2.shape
    has_mask = m2 is not None
    tail_possible = (p_grid * kp_grid * tile_n) > N

    kernel = functools.partial(
        _pmse2d_kernel, has_mask=has_mask, tile_n=tile_n, n_total=N,
        kp_grid=kp_grid, tail_possible=tail_possible)

    in_spec = pl.BlockSpec((B, tile_n), lambda p, kp: (0, p * kp_grid + kp))
    out_spec = pl.BlockSpec((1, B, 1), lambda p, kp: (p, 0, 0))
    part = jax.ShapeDtypeStruct((p_grid, B, 1), jnp.float32)

    inputs = (x2, y2, m2) if has_mask else (x2, y2)
    in_specs = [in_spec] * len(inputs)
    out_shape = (part, part) if has_mask else part
    out_specs = (out_spec, out_spec) if has_mask else out_spec

    outs = pl.pallas_call(
        kernel,
        out_shape=out_shape,
        grid_spec=pltpu.PrefetchScalarGridSpec(
            num_scalar_prefetch=0,
            grid=(p_grid, kp_grid),
            in_specs=in_specs,
            out_specs=out_specs,
        ),
        compiler_params=pltpu.CompilerParams(
            dimension_semantics=("parallel", "arbitrary"),
            vmem_limit_bytes=vmem_limit,
        ),
    )(*inputs)

    if has_mask:
        se_part, ms_part = outs
        return jnp.sum(se_part, axis=(0, 2)), jnp.sum(ms_part, axis=(0, 2))
    return jnp.sum(outs, axis=(0, 2)), None


# --------------------------------------------------------------------------
# Tile sizing (VMEM-budget aware, incl. f32 temporaries & sublane padding)
# --------------------------------------------------------------------------
def _pick_tile_rows(B, dtypes, has_mask, budget, max_block_elems):
    in_bytes = sum(jnp.dtype(d).itemsize for d in dtypes)
    tmp_arrays = 6 if has_mask else 5        # f32 elementwise temps (conservative)
    per_elem = 2 * in_bytes + 4 * tmp_arrays  # 2x: double-buffered input blocks
    tile_r = max(1, budget // (B * 128 * per_elem))
    if max_block_elems is not None:
        tile_r = min(tile_r, max(1, max_block_elems // (B * 128)))
    return tile_r


def _pick_tile_cols(B, dtypes, has_mask, budget, max_block_elems):
    per_col = 0
    for d in dtypes:
        isz = jnp.dtype(d).itemsize
        b_pad = _round_up(B, max(8, 32 // isz))   # sublane padding of small B
        per_col += 2 * b_pad * isz                # double-buffered input blocks
    tmp_arrays = 6 if has_mask else 5
    per_col += tmp_arrays * _round_up(B, 8) * 4   # f32 temporaries
    tile_n = max(1, budget // per_col)
    if max_block_elems is not None:
        tile_n = min(tile_n, max(1, max_block_elems // B))
    return tile_n


# --------------------------------------------------------------------------
# Top-level wrapper
# --------------------------------------------------------------------------
@functools.partial(
    jax.jit,
    static_argnames=("size_average", "has_mask", "max_block_elems",
                     "force_num_cores"))
def _pmse_impl(x, y, mask, size_average, has_mask, max_block_elems,
               force_num_cores):
    B = x.shape[0]
    N = math.prod(x.shape[1:])
    out_dtype = jnp.promote_types(x.dtype, y.dtype)

    if has_mask and mask.dtype == jnp.bool_:
        mask = mask.astype(jnp.int8)     # keep the HBM stream narrow

    x2 = x.reshape(B, N)
    y2 = y.reshape(B, N)
    m2 = mask.reshape(B, N) if has_mask else None

    dtypes = [x2.dtype, y2.dtype] + ([m2.dtype] if has_mask else [])
    min_isz = min(jnp.dtype(d).itemsize for d in dtypes)
    sub_gran = max(8, 32 // min_isz)     # 8 for f32, 16 for bf16, 32 for int8

    vmem_limit, budget = _vmem_budget()
    num_cores = (int(force_num_cores) if force_num_cores is not None
                 else _num_tensorcores())

    if N >= 128 and N % 128 == 0:
        # Primary, sublane/lane-dense path: view (B, N) as (B, R, 128).
        R = N // 128
        x3 = x2.reshape(B, R, 128)
        y3 = y2.reshape(B, R, 128)
        m3 = m2.reshape(B, R, 128) if has_mask else None
        tile_max = _pick_tile_rows(B, dtypes, has_mask, budget, max_block_elems)
        tile_r, p_grid, kp_grid = _plan_split(R, tile_max, sub_gran, num_cores)
        se_sum, m_sum = _pmse_sums_3d(x3, y3, m3, tile_r, p_grid, kp_grid,
                                      vmem_limit)
    else:
        # Pad-free fallback for N not divisible by 128.
        # TODO(synk): for B < 8/16/32 the (B, tile_n) blocks still waste
        # sublanes (VPU side); sizing accounts for the VMEM footprint only.
        tile_max = _pick_tile_cols(B, dtypes, has_mask, budget, max_block_elems)
        tile_n, p_grid, kp_grid = _plan_split(N, tile_max, 128, num_cores)
        se_sum, m_sum = _pmse_sums_2d(x2, y2, m2, tile_n, p_grid, kp_grid,
                                      vmem_limit)

    if size_average:
        if has_mask:
            res = jnp.sum(se_sum) / jnp.sum(m_sum)
        else:
            res = jnp.sum(se_sum) / jnp.float32(B * N)
    else:
        if has_mask:
            # NOTE: an all-zero mask row yields inf/nan, matching PyTorch.
            res = se_sum / m_sum
        else:
            res = se_sum / jnp.float32(N)
    return res.astype(out_dtype)


def pmse(x, y, mask=None, size_average=True, max_block_elems=None,
         force_num_cores=None):
    """Pallas-TPU implementation of PMSE.forward.

    x, y: (B, ...) arrays (e.g. NCHW). mask: optional array of the SAME shape;
    pass it in its narrowest dtype (bool/int8/bf16) — it is streamed as-is and
    cast to f32 on the VPU inside the kernel.
    max_block_elems / force_num_cores: testing knobs (block-size cap, forced
    TensorCore split).
    """
    # TODO(synk): torch-style broadcasting of a lower-rank mask (e.g. (B,1,H,W))
    # is not replicated; mask must already match x's shape.
    has_mask = mask is not None
    return _pmse_impl(
        x, y, mask, bool(size_average), has_mask,
        None if max_block_elems is None else int(max_block_elems),
        None if force_num_cores is None else int(force_num_cores))


# --------------------------------------------------------------------------
# Self-test
# --------------------------------------------------------------------------
if __name__ == "__main__":
    key = jax.random.PRNGKey(0)
    kx, ky, km = jax.random.split(key, 3)

    def ref_pmse(x, y, mask, size_average):
        se = jnp.square(x.astype(jnp.float32) - y.astype(jnp.float32))
        axes = tuple(range(1, x.ndim))
        if mask is not None:
            m = mask.astype(jnp.float32)
            if size_average:
                return jnp.sum(se * m) / jnp.sum(m)
            return jnp.sum(se * m, axis=axes) / jnp.sum(m, axis=axes)
        if size_average:
            return jnp.mean(se)
        return jnp.mean(se, axis=axes)

    def check(out, ref, rtol=1e-5, atol=1e-6):
        out = jax.block_until_ready(out)
        assert out.shape == ref.shape, (out.shape, ref.shape)
        assert jnp.allclose(out.astype(jnp.float32), ref, rtol=rtol, atol=atol)

    # 1) Small aligned NCHW (single block), all four forward variants.
    B, C, H, W = 2, 4, 16, 16
    x = jax.random.normal(kx, (B, C, H, W), dtype=jnp.float32)
    y = jax.random.normal(ky, (B, C, H, W), dtype=jnp.float32)
    mask = (jax.random.uniform(km, (B, C, H, W)) > 0.5).astype(jnp.float32)
    check(pmse(x, y, None, size_average=True), ref_pmse(x, y, None, True))
    check(pmse(x, y, mask, size_average=True), ref_pmse(x, y, mask, True))
    check(pmse(x, y, None, size_average=False), ref_pmse(x, y, None, False))
    check(pmse(x, y, mask, size_average=False), ref_pmse(x, y, mask, False))

    # 2) Multi-chunk + exact 2-slice split + tail-row masking (R=40, tile_r=24).
    B2, C2, H2, W2 = 2, 4, 32, 40            # N = 5120 -> R = 40 rows of 128
    x2 = jax.random.normal(kx, (B2, C2, H2, W2), dtype=jnp.float32)
    y2 = jax.random.normal(ky, (B2, C2, H2, W2), dtype=jnp.float32)
    m2 = (jax.random.uniform(km, (B2, C2, H2, W2)) > 0.3).astype(jnp.float32)
    cap = B2 * 24 * 128
    check(pmse(x2, y2, None, True, max_block_elems=cap, force_num_cores=2),
          ref_pmse(x2, y2, None, True))
    check(pmse(x2, y2, m2, False, max_block_elems=cap, force_num_cores=2),
          ref_pmse(x2, y2, m2, False))
    check(pmse(x2, y2, m2, True), ref_pmse(x2, y2, m2, True))   # default plan

    # 3) 2-slice x multi-chunk grid (R=64, tile_r=16 -> grid (2, 2)).
    B3, C3, H3, W3 = 2, 4, 32, 64            # N = 8192 -> R = 64
    x3 = jax.random.normal(kx, (B3, C3, H3, W3), dtype=jnp.float32)
    y3 = jax.random.normal(ky, (B3, C3, H3, W3), dtype=jnp.float32)
    cap3 = B3 * 16 * 128
    check(pmse(x3, y3, None, False, max_block_elems=cap3, force_num_cores=2),
          ref_pmse(x3, y3, None, False))

    # 4) Narrow-dtype mask streaming: int8 and bool masks.
    mi8 = (jax.random.uniform(km, (B3, C3, H3, W3)) > 0.4).astype(jnp.int8)
    check(pmse(x3, y3, mi8, True), ref_pmse(x3, y3, mi8, True))
    check(pmse(x3, y3, mi8, False, force_num_cores=2),
          ref_pmse(x3, y3, mi8, False))
    mb = jax.random.uniform(km, (B, C, H, W)) > 0.5
    check(pmse(x, y, mb, False), ref_pmse(x, y, mb, False))

    # 5) Unaligned-N fallback (N = 900): default plan and forced split w/ tail.
    B5, C5, H5, W5 = 2, 3, 10, 30
    x5 = jax.random.normal(kx, (B5, C5, H5, W5), dtype=jnp.float32)
    y5 = jax.random.normal(ky, (B5, C5, H5, W5), dtype=jnp.float32)
    m5 = (jax.random.uniform(km, (B5, C5, H5, W5)) > 0.5).astype(jnp.float32)
    check(pmse(x5, y5, None, True), ref_pmse(x5, y5, None, True))
    check(pmse(x5, y5, m5, False, max_block_elems=512, force_num_cores=2),
          ref_pmse(x5, y5, m5, False))

    # 6) Native-dtype streaming: bf16 inputs, f32 accumulation in the kernel.
    xb = x.astype(jnp.bfloat16)
    yb = y.astype(jnp.bfloat16)
    check(pmse(xb, yb, None, True), ref_pmse(xb, yb, None, True),
          rtol=2e-2, atol=1e-3)
    check(pmse(xb, yb, mask, False), ref_pmse(xb, yb, mask, False),
          rtol=2e-2, atol=1e-3)

    print("KERNEL_OK")
</pallas_src>

<mosaic_0001>
module attributes {stable_mosaic.version = 11 : i64} {
  func.func @_pmse3d_kernel(%arg0: i32, %arg1: i32, %arg2: memref<2x8x128xf32, #tpu.memory_space<vmem>>, %arg3: memref<2x8x128xf32, #tpu.memory_space<vmem>>, %arg4: memref<1x2x128xf32, #tpu.memory_space<vmem>>) attributes {dimension_semantics = [#tpu.dimension_semantics<parallel>, #tpu.dimension_semantics<arbitrary>], iteration_bounds = array<i64: 1, 1>, scalar_prefetch = 0 : i64, scratch_operands = 0 : i64, tpu.core_type = #tpu.core_type<tc>, window_params = [{transform_indices = @transform_0, window_bounds = array<i64: 2, 8, 128>}, {transform_indices = @transform_1, window_bounds = array<i64: 2, 8, 128>}, {transform_indices = @transform_2, window_bounds = array<i64: 1, 2, 128>}]} {
    %c0_i32 = arith.constant 0 : i32
    %0 = arith.cmpi eq, %arg1, %c0_i32 : i32
    %1 = arith.extui %0 : i1 to i32
    %c0_i32_0 = arith.constant 0 : i32
    %2 = arith.cmpi ne, %1, %c0_i32_0 : i32
    scf.if %2 {
      %cst_12 = arith.constant 0.000000e+00 : f32
      %12 = vector.broadcast %cst_12 : f32 to vector<1x2x128xf32>
      %c0_13 = arith.constant 0 : index
      %c0_14 = arith.constant 0 : index
      %c0_15 = arith.constant 0 : index
      %13 = vector.load %arg4[%c0_13, %c0_14, %c0_15] : memref<1x2x128xf32, #tpu.memory_space<vmem>>, vector<1x2x128xf32>
      tpu.vector_store %arg4[%c0_13, %c0_14, %c0_15], %12 {strides = array<i32>} : memref<1x2x128xf32, #tpu.memory_space<vmem>>, vector<1x2x128xf32>,
    } else {
    }
    %c0 = arith.constant 0 : index
    %c0_1 = arith.constant 0 : index
    %c0_2 = arith.constant 0 : index
    %3 = vector.load %arg2[%c0, %c0_1, %c0_2] : memref<2x8x128xf32, #tpu.memory_space<vmem>>, vector<2x8x128xf32>
    %c0_3 = arith.constant 0 : index
    %c0_4 = arith.constant 0 : index
    %c0_5 = arith.constant 0 : index
    %4 = vector.load %arg3[%c0_3, %c0_4, %c0_5] : memref<2x8x128xf32, #tpu.memory_space<vmem>>, vector<2x8x128xf32>
    %5 = arith.subf %3, %4 : vector<2x8x128xf32>
    %6 = arith.mulf %5, %5 : vector<2x8x128xf32>
    %c0_6 = arith.constant 0 : index
    %c0_7 = arith.constant 0 : index
    %c0_8 = arith.constant 0 : index
    %7 = vector.load %arg4[%c0_6, %c0_7, %c0_8] : memref<1x2x128xf32, #tpu.memory_space<vmem>>, vector<1x2x128xf32>
    %cst = arith.constant dense<0.000000e+00> : vector<2x128xf32>
    %8 = vector.multi_reduction <add>, %6, %cst [1] : vector<2x8x128xf32> to vector<2x128xf32>
    %9 = vector.shape_cast %8 : vector<2x128xf32> to vector<1x2x128xf32>
    %10 = arith.addf %7, %9 : vector<1x2x128xf32>
    %c0_9 = arith.constant 0 : index
    %c0_10 = arith.constant 0 : index
    %c0_11 = arith.constant 0 : index
    %11 = vector.load %arg4[%c0_9, %c0_10, %c0_11] : memref<1x2x128xf32, #tpu.memory_space<vmem>>, vector<1x2x128xf32>
    tpu.vector_store %arg4[%c0_9, %c0_10, %c0_11], %10 {strides = array<i32>} : memref<1x2x128xf32, #tpu.memory_space<vmem>>, vector<1x2x128xf32>,
    return
  }
  func.func @transform_0(%arg0: i32, %arg1: i32) -> (i32, i32, i32) {
    %c1_i32 = arith.constant 1 : i32
    %0 = arith.muli %arg0, %c1_i32 : i32
    %1 = arith.addi %0, %arg1 : i32
    %c0_i32 = arith.constant 0 : i32
    %c0_i32_0 = arith.constant 0 : i32
    %c0_i32_1 = arith.constant 0 : i32
    return %c0_i32, %1, %c0_i32_0 : i32, i32, i32
  }
  func.func @transform_1(%arg0: i32, %arg1: i32) -> (i32, i32, i32) {
    %c1_i32 = arith.constant 1 : i32
    %0 = arith.muli %arg0, %c1_i32 : i32
    %1 = arith.addi %0, %arg1 : i32
    %c0_i32 = arith.constant 0 : i32
    %c0_i32_0 = arith.constant 0 : i32
    %c0_i32_1 = arith.constant 0 : i32
    return %c0_i32, %1, %c0_i32_0 : i32, i32, i32
  }
  func.func @transform_2(%arg0: i32, %arg1: i32) -> (i32, i32, i32) {
    %c0_i32 = arith.constant 0 : i32
    %c0_i32_0 = arith.constant 0 : i32
    %c0_i32_1 = arith.constant 0 : i32
    return %arg0, %c0_i32, %c0_i32_0 : i32, i32, i32
  }
}

</mosaic_0001>

<bundles_post_ra>
// kernel: _pmse_impl.1
= control target key start
LH: loop header
LB: loop body
LE: loop exit
PB: predicated region body
PF: predicated region fallthrough
CT: control target
= control target key end

     0   :  { %v95_v0 = vmov 0.0   ;;  %vm73_vm0 = vcmask 1041409   ;;  %s132_s2 = inlined_call_operand.vmem [shape: f32[1,2,128], index: 2, kind: output, shape index: {}]   ;;  %s133_s0 = inlined_call_operand.vmem [shape: f32[2,8,128], index: 0, kind: input, shape index: {}]   ;;  %s134_s1 = inlined_call_operand.vmem [shape: f32[2,8,128], index: 1, kind: input, shape index: {}]  }
   0x1   :  { %49 = vst [vmem:[%s132_s2] sm:$0x3] %v95_v0  ;;  %v50_v1 = vld [vmem:[%s133_s0] sm:$0xff]  ;;  %v51_v2 = vld [vmem:[%s133_s0 + $0x8] sm:$0xff] }
   0x2   :  { %v52_v3 = vld [vmem:[%s134_s1] sm:$0xff]  ;;  %v53_v4 = vld [vmem:[%s134_s1 + $0x8] sm:$0xff] }
   0x3   :  { %v54_v5 = vsub.f32 %v50_v1, %v52_v3  ;;  %v55_v6 = vsub.f32 %v51_v2, %v53_v4 }
   0x5   :  { %v56_v7 = vmul.f32 %v54_v5, %v54_v5  ;;  %v57_v8 = vmul.f32 %v55_v6, %v55_v6 }
   0x7   :  { %v59_v9 = vrot.slane %v56_v7, 4  ;;  %v65_v10 = vrot.slane %v57_v8, 4 }
   0x8   :  { %v58_v20 = vld [vmem:[%s132_s2] sm:$0x3] }
   0x9   :  { %v60_v11 = vadd.f32 %v59_v9, %v56_v7  ;;  %v66_v12 = vadd.f32 %v65_v10, %v57_v8 }
   0xb   :  { %v61_v13 = vrot.slane %v60_v11, 2  ;;  %v67_v14 = vrot.slane %v66_v12, 2 }
   0xd   :  { %v62_v15 = vadd.f32 %v61_v13, %v60_v11  ;;  %v68_v16 = vadd.f32 %v67_v14, %v66_v12 }
   0xf   :  { %v63_v17 = vrot.slane %v62_v15, 1  ;;  %v69_v18 = vrot.slane %v68_v16, 1 }
  0x11   :  { %v64_v19 = vadd.f32 %v63_v17, %v62_v15  ;;  %v70_v21 = vadd.f32 %v69_v18, %v68_v16 }
  0x13   :  { %v74_v22 = vsel %vm73_vm0, %v70_v21, %v64_v19 }
  0x14   :  { %v76_v23 = vadd.f32 %v74_v22, %v58_v20 }
  0x16   :  { %77 = vst [vmem:[%s132_s2] sm:$0x3] %v76_v23 }

</bundles_post_ra>
